<compile_context>
chip_gen: v6e
topology: v6e:2x2x1
jax: 0.10.0
libtpu: 0.0.40
codegen_flags: <defaults>
</compile_context>

<pallas_src>
import functools
import math

import jax
import jax.numpy as jnp
from jax import lax
from jax.experimental import pallas as pl
from jax.experimental.pallas import tpu as pltpu

_LANE = 128


def _device_vmem_bytes():
    """Physical VMEM of the attached TPU; conservative 64 MiB (v7x) fallback."""
    try:
        info = pltpu.get_tpu_info()
        cap = getattr(info, "vmem_capacity_bytes", None)
        if cap:
            return int(cap)
    except Exception:
        pass
    return 64 * 1024 * 1024


def _pick_query_tile(sq, sk, d_padded, in_bytes, attn_bytes, has_full_mask,
                     writes_attn, vmem_bytes):
    """Largest query tile whose per-step working set fits the VMEM budget."""
    budget = int(0.55 * vmem_bytes)              # headroom for scratch / pipelining
    kv = 2 * 2 * sk * d_padded * in_bytes        # K, V (double-buffered)

    def fits(tq):
        q_io = 2 * 2 * tq * d_padded * in_bytes              # Q in + ctx out
        attn_o = (2 * tq * sk * attn_bytes) if writes_attn else 0
        mask_i = (2 * tq * sk) if has_full_mask else 2 * sk  # int8
        temps = 2 * tq * sk * 4 + tq * d_padded * 4          # f32 scores/e + accum
        return kv + q_io + attn_o + mask_i + temps <= budget

    candidates = [t for t in (1024, 512, 256, 128, 64, 32, 16, 8) if sq % t == 0]
    for t in candidates:
        if fits(t):
            return t
    if candidates:
        # Nothing fits even at the smallest legal tile; take it anyway.
        # TODO(synk): for very long Sk a flash-style key-axis tiling would be
        # needed; this kernel materializes the full (TQ, Sk) weight row block
        # because the module must return the attention weights.
        return candidates[-1]
    return sq  # Sq not a multiple of 8: full-extent block is always legal


def _sdpa_body(q, k, v, mask, scale, ctx_ref, attn_ref):
    # q: (TQ, Dp), k/v: (Sk, Dp), mask: (TQ or 1, Sk) int8 or None.
    scores = lax.dot_general(
        q, k, dimension_numbers=(((1,), (1,)), ((), ())),
        preferred_element_type=jnp.float32)
    scores = scores * scale  # 1/sqrt(d_orig), applied in f32 like the reference.

    if mask is not None:
        # masked_fill(mask == 0, -inf); broadcast over rows for (1, Sk) masks.
        scores = jnp.where(mask != 0, scores, -jnp.inf)

    m = jnp.max(scores, axis=-1, keepdims=True)
    e = jnp.exp(scores - m)
    s = jnp.sum(e, axis=-1, keepdims=True)
    w = e * (1.0 / s)  # exact row reciprocal (cheap: (TQ,1) divide)

    # TODO(synk): nn.Dropout(p>0) would apply a pltpu.prng_random_bits Bernoulli
    # mask to w here; the module default p=0.0 is identity.

    w_lp = w.astype(v.dtype)  # single cast, reused for the store and the PV matmul
    if attn_ref is not None:
        attn_ref[0] = w_lp.astype(attn_ref.dtype)

    ctx = lax.dot_general(
        w_lp, v, dimension_numbers=(((1,), (0,)), ((), ())),
        preferred_element_type=jnp.float32)
    ctx_ref[0] = ctx.astype(ctx_ref.dtype)


def _make_kernel(scale, has_mask, return_weights):
    if has_mask and return_weights:
        def kernel(q_ref, k_ref, v_ref, m_ref, ctx_ref, attn_ref):
            _sdpa_body(q_ref[0], k_ref[0], v_ref[0], m_ref[0], scale, ctx_ref, attn_ref)
    elif has_mask:
        def kernel(q_ref, k_ref, v_ref, m_ref, ctx_ref):
            _sdpa_body(q_ref[0], k_ref[0], v_ref[0], m_ref[0], scale, ctx_ref, None)
    elif return_weights:
        def kernel(q_ref, k_ref, v_ref, ctx_ref, attn_ref):
            _sdpa_body(q_ref[0], k_ref[0], v_ref[0], None, scale, ctx_ref, attn_ref)
    else:
        def kernel(q_ref, k_ref, v_ref, ctx_ref):
            _sdpa_body(q_ref[0], k_ref[0], v_ref[0], None, scale, ctx_ref, None)
    return kernel


@functools.partial(jax.jit, static_argnames=("return_weights",))
def scaled_dot_product_attention(query, key, value, mask=None, return_weights=True):
    """query [B,H,Sq,D]; key/value [B,H,Sk,D]; mask broadcastable to [B,H,Sq,Sk] or None.

    Returns (context [B,H,Sq,D], attention_weights [B,H,Sq,Sk]) when
    return_weights=True (default, matches the PyTorch module), else context only.
    Fully-masked rows produce NaN, matching torch masked_fill(-inf) + softmax.
    """
    B, H, Sq, D = query.shape
    Sk = key.shape[-2]
    BH = B * H
    in_dtype = query.dtype
    in_bytes = jnp.dtype(in_dtype).itemsize
    scale = 1.0 / math.sqrt(float(D))  # d_q of the ORIGINAL head dim

    # Lane-dense head dim: pad D to 128 when smaller (ctx sliced back afterwards).
    Dp = _LANE if D < _LANE else D
    if Dp != D:
        pad = ((0, 0), (0, 0), (0, 0), (0, Dp - D))
        q4, k4, v4 = jnp.pad(query, pad), jnp.pad(key, pad), jnp.pad(value, pad)
    else:
        q4, k4, v4 = query, key, value
    q = q4.reshape(BH, Sq, Dp)
    k = k4.reshape(BH, Sk, Dp)
    v = v4.reshape(BH, Sk, Dp)

    # ---- mask normalization (never broadcast over batch/head/Sq in HBM) ----
    has_mask = mask is not None
    has_full_mask = False
    if has_mask:
        m4 = mask
        while m4.ndim < 4:
            m4 = m4[None]
        if m4.ndim != 4:
            raise ValueError(f"mask rank {mask.ndim} > 4 is not supported")
        Bm, Hm, Sqm, Skm = m4.shape
        if Bm not in (1, B) or Hm not in (1, H) or Sqm not in (1, Sq) or Skm not in (1, Sk):
            raise ValueError(f"mask shape {mask.shape} not broadcastable to {(B, H, Sq, Sk)}")
        if Skm != Sk:
            m4 = jnp.broadcast_to(m4, (Bm, Hm, Sqm, Sk))
        m8 = (m4 != 0).astype(jnp.int8).reshape(Bm * Hm, Sqm, Sk)
        has_full_mask = Sqm == Sq

    # ---- tile / VMEM sizing -------------------------------------------------
    vmem_cap = _device_vmem_bytes()
    vmem_limit = max(32 * 1024 * 1024,
                     min(int(0.75 * vmem_cap), vmem_cap - 16 * 1024 * 1024))
    TQ = _pick_query_tile(Sq, Sk, Dp, in_bytes, in_bytes, has_full_mask,
                          return_weights, vmem_cap)
    num_q_tiles = Sq // TQ
    grid = (BH, num_q_tiles)

    # ---- specs --------------------------------------------------------------
    in_specs = [
        pl.BlockSpec((1, TQ, Dp), lambda i, j: (i, j, 0)),
        pl.BlockSpec((1, Sk, Dp), lambda i, j: (i, 0, 0)),  # K resident across q tiles
        pl.BlockSpec((1, Sk, Dp), lambda i, j: (i, 0, 0)),  # V resident across q tiles
    ]
    operands = [q, k, v]
    if has_mask:
        if Bm == B and Hm == H:
            bh = lambda i: i
        elif Bm == B:                      # Hm == 1
            bh = lambda i: i // H
        elif Hm == H:                      # Bm == 1
            bh = lambda i: i % H
        else:                              # shared mask
            bh = lambda i: 0
        if has_full_mask:
            in_specs.append(pl.BlockSpec((1, TQ, Sk), lambda i, j: (bh(i), j, 0)))
        else:  # key-padding mask: one (1, Sk) row per head, broadcast in-kernel
            in_specs.append(pl.BlockSpec((1, 1, Sk), lambda i, j: (bh(i), 0, 0)))
        operands.append(m8)

    ctx_spec = pl.BlockSpec((1, TQ, Dp), lambda i, j: (i, j, 0))
    ctx_sds = jax.ShapeDtypeStruct((BH, Sq, Dp), in_dtype)
    if return_weights:
        out_shape = (ctx_sds, jax.ShapeDtypeStruct((BH, Sq, Sk), in_dtype))
        out_specs = (ctx_spec, pl.BlockSpec((1, TQ, Sk), lambda i, j: (i, j, 0)))
    else:
        out_shape = ctx_sds
        out_specs = ctx_spec

    compiler_params = pltpu.CompilerParams(
        # Shard only the batch*head axis across TensorCores so K/V residency is
        # preserved per core; the query-tile axis is a plain sequential loop.
        dimension_semantics=("parallel", "arbitrary"),
        vmem_limit_bytes=vmem_limit,
    )

    result = pl.pallas_call(
        _make_kernel(scale, has_mask, return_weights),
        out_shape=out_shape,
        grid=grid,
        in_specs=in_specs,
        out_specs=out_specs,
        compiler_params=compiler_params,
    )(*operands)

    ctx = result[0] if return_weights else result
    if Dp != D:
        ctx = ctx[..., :D]
    ctx = ctx.reshape(B, H, Sq, D)
    if return_weights:
        return ctx, result[1].reshape(B, H, Sq, Sk)
    return ctx


def _reference(query, key, value, mask=None):
    d_q = query.shape[-1]
    scores = jnp.einsum("bhqd,bhkd->bhqk",
                        query.astype(jnp.float32),
                        key.astype(jnp.float32)) / jnp.sqrt(jnp.float32(d_q))
    if mask is not None:
        scores = jnp.where(mask != 0, scores, -jnp.inf)
    w = jax.nn.softmax(scores, axis=-1)
    ctx = jnp.einsum("bhqk,bhkd->bhqd", w, value.astype(jnp.float32))
    return ctx, w


if __name__ == "__main__":
    B, H, Sq, Sk, D = 2, 2, 8, 8, 32
    key0 = jax.random.PRNGKey(0)
    kq, kk, kv, km = jax.random.split(key0, 4)

    query = jax.random.normal(kq, (B, H, Sq, D), dtype=jnp.float32)
    key_t = jax.random.normal(kk, (B, H, Sk, D), dtype=jnp.float32)
    value = jax.random.normal(kv, (B, H, Sk, D), dtype=jnp.float32)
    # Keep ~75% of key positions; always keep key position 0 so no query row is
    # fully masked (fully-masked rows are NaN in both implementations).
    mask = (jax.random.uniform(km, (B, H, Sq, Sk)) > 0.25).at[..., 0].set(True)

    tol = dict(atol=2e-3, rtol=2e-3)

    # Full [B, H, Sq, Sk] mask.
    ctx, attn = scaled_dot_product_attention(query, key_t, value, mask)
    jax.block_until_ready((ctx, attn))
    ref_ctx, ref_attn = _reference(query, key_t, value, mask)
    assert jnp.allclose(ctx, ref_ctx, **tol)
    assert jnp.allclose(attn, ref_attn, **tol)

    # mask=None path (kernel variant with no mask operand at all).
    ctx2, attn2 = scaled_dot_product_attention(query, key_t, value)
    jax.block_until_ready((ctx2, attn2))
    ref_ctx2, ref_attn2 = _reference(query, key_t, value, None)
    assert jnp.allclose(ctx2, ref_ctx2, **tol)
    assert jnp.allclose(attn2, ref_attn2, **tol)

    # Key-padding mask [B, 1, 1, Sk]: stays un-broadcast in HBM, (1, Sk) row per head.
    pmask = (jax.random.uniform(km, (B, 1, 1, Sk)) > 0.25).at[..., 0].set(True)
    ctx3, attn3 = scaled_dot_product_attention(query, key_t, value, pmask)
    jax.block_until_ready((ctx3, attn3))
    ref_ctx3, ref_attn3 = _reference(query, key_t, value, pmask)
    assert jnp.allclose(ctx3, ref_ctx3, **tol)
    assert jnp.allclose(attn3, ref_attn3, **tol)

    # Context-only variant (skips the dominant attention-weights HBM write).
    ctx4 = scaled_dot_product_attention(query, key_t, value, mask, return_weights=False)
    jax.block_until_ready(ctx4)
    assert jnp.allclose(ctx4, ref_ctx, **tol)

    print("KERNEL_OK")
</pallas_src>

<mosaic_0001>
module attributes {stable_mosaic.version = 11 : i64} {
  func.func @kernel(%arg0: i32, %arg1: i32, %arg2: memref<1x8x128xf32, #tpu.memory_space<vmem>>, %arg3: memref<1x8x128xf32, #tpu.memory_space<vmem>>, %arg4: memref<1x8x128xf32, #tpu.memory_space<vmem>>, %arg5: memref<1x8x8xi8, #tpu.memory_space<vmem>>, %arg6: memref<1x8x128xf32, #tpu.memory_space<vmem>>, %arg7: memref<1x8x8xf32, #tpu.memory_space<vmem>>) attributes {dimension_semantics = [#tpu.dimension_semantics<parallel>, #tpu.dimension_semantics<arbitrary>], iteration_bounds = array<i64: 4, 1>, scalar_prefetch = 0 : i64, scratch_operands = 0 : i64, tpu.core_type = #tpu.core_type<tc>, window_params = [{transform_indices = @transform_0, window_bounds = array<i64: 1, 8, 128>}, {transform_indices = @transform_1, window_bounds = array<i64: 1, 8, 128>}, {transform_indices = @transform_2, window_bounds = array<i64: 1, 8, 128>}, {transform_indices = @transform_3, window_bounds = array<i64: 1, 8, 8>}, {transform_indices = @transform_4, window_bounds = array<i64: 1, 8, 128>}, {transform_indices = @transform_5, window_bounds = array<i64: 1, 8, 8>}]} {
    %c0 = arith.constant 0 : index
    %c0_0 = arith.constant 0 : index
    %c0_1 = arith.constant 0 : index
    %0 = vector.load %arg2[%c0, %c0_0, %c0_1] : memref<1x8x128xf32, #tpu.memory_space<vmem>>, vector<1x8x128xf32>
    %1 = vector.shape_cast %0 : vector<1x8x128xf32> to vector<8x128xf32>
    %c0_2 = arith.constant 0 : index
    %c0_3 = arith.constant 0 : index
    %c0_4 = arith.constant 0 : index
    %2 = vector.load %arg3[%c0_2, %c0_3, %c0_4] : memref<1x8x128xf32, #tpu.memory_space<vmem>>, vector<1x8x128xf32>
    %3 = vector.shape_cast %2 : vector<1x8x128xf32> to vector<8x128xf32>
    %c0_5 = arith.constant 0 : index
    %c0_6 = arith.constant 0 : index
    %c0_7 = arith.constant 0 : index
    %4 = vector.load %arg4[%c0_5, %c0_6, %c0_7] : memref<1x8x128xf32, #tpu.memory_space<vmem>>, vector<1x8x128xf32>
    %5 = vector.shape_cast %4 : vector<1x8x128xf32> to vector<8x128xf32>
    %c0_8 = arith.constant 0 : index
    %c0_9 = arith.constant 0 : index
    %c0_10 = arith.constant 0 : index
    %6 = vector.load %arg5[%c0_8, %c0_9, %c0_10] : memref<1x8x8xi8, #tpu.memory_space<vmem>>, vector<1x8x8xi8>
    %7 = vector.shape_cast %6 : vector<1x8x8xi8> to vector<8x8xi8>
    %cst = arith.constant dense<0.000000e+00> : vector<8x8xf32>
    %8 = tpu.matmul %1, %3, %cst {dimension_numbers = #tpu.dot_dimension_numbers<[1], [1], [0], [0], [0, 0, 1, 0], [], []>} : vector<8x128xf32>, vector<8x128xf32>, vector<8x8xf32> -> vector<8x8xf32>
    %cst_11 = arith.constant 0.176776692 : f32
    %9 = vector.broadcast %cst_11 : f32 to vector<8x8xf32>
    %10 = arith.mulf %8, %9 : vector<8x8xf32>
    %c0_i8 = arith.constant 0 : i8
    %11 = vector.broadcast %c0_i8 : i8 to vector<8x8xi8>
    %12 = arith.cmpi ne, %7, %11 : vector<8x8xi8>
    %cst_12 = arith.constant 0xFF800000 : f32
    %13 = vector.broadcast %cst_12 : f32 to vector<8x8xf32>
    %14 = arith.select %12, %10, %13 : vector<8x8xi1>, vector<8x8xf32>
    %cst_13 = arith.constant dense<0xFF800000> : vector<8xf32>
    %15 = vector.multi_reduction <maximumf>, %14, %cst_13 [1] : vector<8x8xf32> to vector<8xf32>
    %16 = vector.shape_cast %15 : vector<8xf32> to vector<8x1xf32>
    %17 = vector.broadcast %16 : vector<8x1xf32> to vector<8x8xf32>
    %18 = arith.subf %14, %17 : vector<8x8xf32>
    %19 = math.exp %18 : vector<8x8xf32>
    %cst_14 = arith.constant dense<0.000000e+00> : vector<8xf32>
    %20 = vector.multi_reduction <add>, %19, %cst_14 [1] : vector<8x8xf32> to vector<8xf32>
    %21 = vector.shape_cast %20 : vector<8xf32> to vector<8x1xf32>
    %cst_15 = arith.constant 1.000000e+00 : f32
    %22 = vector.broadcast %cst_15 : f32 to vector<8x1xf32>
    %23 = arith.divf %22, %21 : vector<8x1xf32>
    %24 = vector.broadcast %23 : vector<8x1xf32> to vector<8x8xf32>
    %25 = arith.mulf %19, %24 : vector<8x8xf32>
    %c0_16 = arith.constant 0 : index
    %c0_17 = arith.constant 0 : index
    %c0_18 = arith.constant 0 : index
    %26 = vector.load %arg7[%c0_16, %c0_17, %c0_18] : memref<1x8x8xf32, #tpu.memory_space<vmem>>, vector<1x8x8xf32>
    %27 = vector.shape_cast %26 : vector<1x8x8xf32> to vector<8x8xf32>
    %28 = vector.shape_cast %25 : vector<8x8xf32> to vector<1x8x8xf32>
    tpu.vector_store %arg7[%c0_16, %c0_17, %c0_18], %28 {strides = array<i32>} : memref<1x8x8xf32, #tpu.memory_space<vmem>>, vector<1x8x8xf32>,
    %cst_19 = arith.constant dense<0.000000e+00> : vector<8x128xf32>
    %29 = tpu.matmul %25, %5, %cst_19 {dimension_numbers = #tpu.dot_dimension_numbers<[1], [0], [0], [1], [0, 0, 1, 1], [], []>} : vector<8x8xf32>, vector<8x128xf32>, vector<8x128xf32> -> vector<8x128xf32>
    %c0_20 = arith.constant 0 : index
    %c0_21 = arith.constant 0 : index
    %c0_22 = arith.constant 0 : index
    %30 = vector.load %arg6[%c0_20, %c0_21, %c0_22] : memref<1x8x128xf32, #tpu.memory_space<vmem>>, vector<1x8x128xf32>
    %31 = vector.shape_cast %30 : vector<1x8x128xf32> to vector<8x128xf32>
    %32 = vector.shape_cast %29 : vector<8x128xf32> to vector<1x8x128xf32>
    tpu.vector_store %arg6[%c0_20, %c0_21, %c0_22], %32 {strides = array<i32>} : memref<1x8x128xf32, #tpu.memory_space<vmem>>, vector<1x8x128xf32>,
    return
  }
  func.func @transform_0(%arg0: i32, %arg1: i32) -> (i32, i32, i32) {
    %c0_i32 = arith.constant 0 : i32
    %c0_i32_0 = arith.constant 0 : i32
    return %arg0, %arg1, %c0_i32 : i32, i32, i32
  }
  func.func @transform_1(%arg0: i32, %arg1: i32) -> (i32, i32, i32) {
    %c0_i32 = arith.constant 0 : i32
    %c0_i32_0 = arith.constant 0 : i32
    %c0_i32_1 = arith.constant 0 : i32
    return %arg0, %c0_i32, %c0_i32_0 : i32, i32, i32
  }
  func.func @transform_2(%arg0: i32, %arg1: i32) -> (i32, i32, i32) {
    %c0_i32 = arith.constant 0 : i32
    %c0_i32_0 = arith.constant 0 : i32
    %c0_i32_1 = arith.constant 0 : i32
    return %arg0, %c0_i32, %c0_i32_0 : i32, i32, i32
  }
  func.func @transform_3(%arg0: i32, %arg1: i32) -> (i32, i32, i32) {
    %c0_i32 = arith.constant 0 : i32
    %c0_i32_0 = arith.constant 0 : i32
    return %arg0, %arg1, %c0_i32 : i32, i32, i32
  }
  func.func @transform_4(%arg0: i32, %arg1: i32) -> (i32, i32, i32) {
    %c0_i32 = arith.constant 0 : i32
    %c0_i32_0 = arith.constant 0 : i32
    return %arg0, %arg1, %c0_i32 : i32, i32, i32
  }
  func.func @transform_5(%arg0: i32, %arg1: i32) -> (i32, i32, i32) {
    %c0_i32 = arith.constant 0 : i32
    %c0_i32_0 = arith.constant 0 : i32
    return %arg0, %arg1, %c0_i32 : i32, i32, i32
  }
}

</mosaic_0001>

<bundles_post_ra>
// kernel: scaled_dot_product_attention.1
= control target key start
LH: loop header
LB: loop body
LE: loop exit
PB: predicated region body
PF: predicated region fallthrough
CT: control target
= control target key end

     0   :  { %11 = vsyncpa [#allocation3], 0  ;;  %s1066_s0 = inlined_call_operand.vmem [shape: f32[4,8,128], index: 0, kind: input, shape index: {}]   ;;  %s1067_s1 = inlined_call_operand.vmem [shape: f32[4,8,128], index: 1, kind: input, shape index: {}]   ;;  %s1068_s2 = inlined_call_operand.vmem [shape: f32[4,8,128], index: 2, kind: input, shape index: {}]   ;;  %s1069_s3 = inlined_call_operand.vmem [shape: s8[4,8,8], index: 3, kind: input, shape index: {}]   ;;  %s1070_s4 = inlined_call_operand.hbm [shape: f32[4,8,128], index: 4, kind: output, shape index: {0}]   ;;  %s1071_s5 = inlined_call_operand.hbm [shape: f32[4,8,8], index: 5, kind: output, shape index: {1}]  }
   0x1   :  { %13 = vsyncpa [#allocation3 + $0x1], 0 }
   0x2   :  { %14 = vsyncpa [#allocation5], 0 }
   0x3   :  { %16 = vsyncpa [#allocation5 + $0x1], 0  ;;  %s909_s18 = smov 0   ;;  %s911_s19 = smov 0  }
   0x4   :  { %s913_s20 = smov 0   ;;  %s915_s21 = smov 0  }
   0x5   :  { %s917_s22 = smov 0   ;;  %s919_s23 = smov 0  }
   0x6 LB: > { %s667_s24 = sadd.s32 4294967295, %s872_s23   ;;  %s668_s25 = sadd.s32 4294967294, %s872_s23   ;;  %s872_s23 = sphi %s919_s23, %s22_s23   ;;  %s868_s22 = sphi %s917_s22, %s1080_s22   ;;  %s864_s21 = sphi %s915_s21, %s1079_s21   ;;  %s860_s20 = sphi %s913_s20, %s1078_s20   ;;  %s856_s19 = sphi %s911_s19, %s1077_s19   ;;  %s852_s18 = sphi %s909_s18, %s1076_s18  }
   0x7   : > { %s34_s26 = sadd.s32 1, %s868_s22  ;;  %s151_s27 = sadd.s32 1, %s860_s20 }
   0x8   : > { %p36_p0 = scmp.ge.s32.totalorder %s34_s26, 4  ;;  %p161_p1 = scmp.ne.s32.totalorder %s860_s20, %s856_s19 }
   0x9   : > { %p162_p2 = scmp.eq.s32.totalorder %s667_s24, 3  ;;  %p167_p3 = scmp.ne.s32.totalorder %s856_s19, %s852_s18 }
   0xa   : > { %s1082_s26 = smov (%p36_p0, %s34_s26), 0  ;;  %p168_p5 = scmp.eq.s32.totalorder %s668_s25, 3 }
   0xb   : > { %p949_p4 = por %p162_p2, %p161_p1  ;;  %s146_s29 = ssub.s32 %s868_s22, %s1082_s26 }
   0xc   : > { %p671_p6 = scmp.ge.s32.totalorder %s872_s23, 1  ;;  %p149_p7 = scmp.eq.s32.totalorder %s146_s29, 0 }
   0xd   : > { %p956_p8 = por %p168_p5, %p167_p3  ;;  %p248_p9 = scmp.lt.s32.totalorder %s872_s23, 5 }
   0xe   : > { %s962_s6 = scalar_select %p149_p7, %s860_s20, %s151_s27  }
   0xf   : > { %p249_p10 = pnand %p671_p6, %p248_p9 }
  0x10   : > { %p298_p11 = scmp.lt.s32.totalorder (!%p249_p10), %s864_s21, 3  ;;  %s877_s17 = smov (!%p249_p10), [#allocation4]  }
  0x11   : > { %252 = sbr.rel (%p249_p10) target bundleno = 745 (0x2e9), region = 36 }
  0x16   : > { %v874_v0 = vmov 0.0   ;;  %vm875_vm0 = vmmov 0   ;;  %s299_s7 = scalar_select %p298_p11, %s864_s21, 3  ;;  %v876_v4 = vmov 0   ;;  %vm402_vm3 = vcmask 64512  }
  0x17   : > { %689 = vmatprep.subr.mxu0 %v874_v0  ;;  %691 = vmatprep.mubr.msk.f32.mxu0 %vm875_vm0, %v874_v0 }
  0x18   : > { %694 = vmatprep.subr.mxu1 %v874_v0  ;;  %696 = vmatprep.mubr.msk.f32.mxu1 %vm875_vm0, %v874_v0  ;;  %s966_s8 = sshll.u32 %s299_s7, 3  ;;  %s677_s15 = sshll.u32 %s299_s7, 1 }
  0x19   : > { %s308_s11 = scalar_lea.vmem %s1067_s1, %s966_s8  ;;  %s304_s14 = scalar_lea.vmem %s1066_s0, %s966_s8 }
  0x1a   : > { %v323_v1 = vld [vmem:[%s308_s11] sm:$0xff]  ;;  %s319_s24 = scalar_lea.vmem %s1069_s3, %s677_s15  ;;  %s312_s29 = scalar_lea.vmem %s1068_s2, %s966_s8 }
  0x1b   : > { %690 = vmatpush3.xpose.msra.mxu0 %v323_v1  ;;  %v322_v2 = vld [vmem:[%s304_s14] sm:$0xff]  ;;  %s986_s7 = sand.u32 1, %s856_s19   ;;  %s1072_s8 = sshll.u32 %s864_s21, 7 }
  0x1c   : > { %v325_v3 = vld [vmem:[%s319_s24] sm:$0x3]  ;;  %s672_s9 = sshll.u32 %s986_s7, 3  ;;  %s522_s13 = scalar_lea.hbm %s1071_s5, %s1072_s8 }
  0x1d   : > { %vm397_vm1 = vnez %v325_v3  ;;  %v324_v17 = vld [vmem:[%s312_s29] sm:$0xff]  ;;  %s297_s10 = scalar_lea.vmem [#allocation4], %s672_s9  ;;  %s496_s15 = scalar_lea.sflag [#allocation5], %s986_s7 }
  0x1e   : > { %692 = vmatmul.mubr.f32.vlgmr.msra.gmra.mxu0 %v322_v2  ;;  %v398_v5 = vsel %vm397_vm1, 16843009, %v876_v4  ;;  %695 = vmatpush3.msra.mxu1 %v324_v17  ;;  %s524_s14 = sshll.u32 %s297_s10, 4  ;;  %s770_s24 = sshll.u32 %s877_s17, 4  ;;  %s525_s14 = int_to_ptr.vmem [resolvable:$true] %s524_s14  ;;  %s771_s24 = int_to_ptr.vmem [resolvable:$false] %s770_s24 }
  0x1f   : > { %v399_v6 = vunpack.c.0.s8 %v398_v5  ;;  %s766_s16 = scalar_lea.vmem %s525_s14, 128  ;;  %s772_s25 = scalar_lea.vmem %s771_s24, 256 }
  0x20   : > { %p767_p12 = scmp.ne.s32.totalorder %s525_s14, %s766_s16  ;;  %p773_p1 = scmp.lt.s32.totalorder %s525_s14, %s771_s24 }
  0x21   : > { %vm400_vm2 = vcmp.ne.s32.totalorder %v399_v6, 0  ;;  %p774_p2 = scmp.lt.s32.totalorder %s772_s25, %s766_s16 }
  0x22   : > { %p768_p13 = pnand %p767_p12, %p949_p4 }
  0x23   : > { %p775_p3 = por %p774_p2, %p773_p1 }
  0x24   : > { %p769_p0 = pneg %p768_p13 }
  0x26   : > { %p776_p5 = pnand %p775_p3, %p769_p0 }
  0xde   : > { %v392_v7 = vpop.f32.mrf.mxu0 }
  0xdf   : > { %v396_v8 = vmul.f32 0.17677669, %v392_v7 }
  0xe0   : > { %v693_v9 = vpop.f32.mrf.mxu0 }
  0xe1   : > { %v401_v10 = vsel %vm400_vm2, %v396_v8, -inf }
  0xe2   : > { %v403_v11 = vsel %vm402_vm3, %v401_v10, -inf }
  0xe3   : > { %404 = vmax.xlane.f32.xlu0 %v403_v11 }
 0x16c   : > { %v405_v12 = vpop.xlane.xlu0 %404 }
 0x16d   : > { %v406_v13 = vsub.f32 %v401_v10, %v405_v12 }
 0x16f   : > { %v407_v14 = vmul.f32 1.442695, %v406_v13 }
 0x171   : > { %762 = vpow2.f32 %v407_v14 }
 0x17e   : > { %v763_v15 = vpop.eup %762 }
 0x17f   : > { %v409_v16 = vsel %vm402_vm3, %v763_v15, 0.0 }
 0x180   : > { %410 = vadd.xlane.f32.xlu0 %v409_v16 }
 0x209   : > { %v411_v18 = vpop.xlane.xlu0 %410 }
 0x20a   : > { %764 = vrcp.f32 %v411_v18 }
 0x217   : > { %v765_v19 = vpop.eup %764 }
 0x218   : > { %v414_v20 = vmul.f32 %v765_v19, %v763_v15 }
 0x21a   : > { %697 = vmatmul.mubr.msk.f32.vlgmr.msra.gmra.mxu1 %vm402_vm3, %v414_v20  ;;  %415 = vst.msk [vmem:[%s297_s10] sm:$0xff] %vm402_vm3, %v414_v20 }
 0x21b   : > { %779 = shalt.err (!%p776_p5)
}
 0x21c   : > { %s780_s27 = scalar_lea.hbm %s522_s13, 128  ;;  %s784_s11 = scalar_lea.hbm %s1071_s5, 512 }
 0x21d   : > { %p781_p6 = scmp.ne.s32.totalorder %s522_s13, %s780_s27  ;;  %p785_p10 = scmp.lt.s32.totalorder %s522_s13, %s1071_s5 }
 0x21e   : > { %p786_p11 = scmp.lt.s32.totalorder %s784_s11, %s780_s27 }
 0x21f   : > { %p782_p7 = pnand %p781_p6, %p949_p4 }
 0x220   : > { %p787_p12 = por %p786_p11, %p785_p10 }
 0x221   : > { %p783_p9 = pneg %p782_p7 }
 0x223   : > { %p788_p13 = pnand %p787_p12, %p783_p9 }
 0x225   : > { %791 = shalt.err (!%p788_p13)
}
 0x226   : > { %700 = dma.vmem_to_hbm [thread:$0]  (%p949_p4), %s525_s14, 128, %s522_s13, %s496_s15  }
 0x227   : > { %s290_s16 = scalar_lea.vmem [#allocation2], %s672_s9  ;;  %s1075_s24 = sshll.u32 %s864_s21, 7 }
 0x228   : > { %s510_s17 = sshll.u32 %s290_s16, 4  ;;  %s1021_s27 = scalar_lea.hbm %s1070_s4, %s1075_s24  ;;  %s1014_s17 = int_to_ptr.vmem [resolvable:$true] %s510_s17 }
 0x229   : > { %s491_s29 = scalar_lea.sflag [#allocation3], %s986_s7  ;;  %s792_s10 = scalar_lea.vmem %s1014_s17, 128 }
 0x22a   : > { %p793_p0 = scmp.ne.s32.totalorder %s1014_s17, %s792_s10  ;;  %s878_s9 = smov [#allocation2]  }
 0x22b   : > { %s796_s13 = sshll.u32 %s878_s9, 4  ;;  %s797_s13 = int_to_ptr.vmem [resolvable:$false] %s796_s13 }
 0x22c   : > { %p794_p1 = pnand %p793_p0, %p949_p4  ;;  %s798_s21 = scalar_lea.vmem %s797_s13, 256 }
 0x22d   : > { %p799_p3 = scmp.lt.s32.totalorder %s1014_s17, %s797_s13  ;;  %p800_p5 = scmp.lt.s32.totalorder %s798_s21, %s792_s10 }
 0x22e   : > { %p795_p2 = pneg %p794_p1 }
 0x22f   : > { %p801_p6 = por %p800_p5, %p799_p3 }
 0x231   : > { %p802_p7 = pnand %p801_p6, %p795_p2 }
 0x2da   : > { %v485_v21 = vpop.f32.mrf.mxu1 }
 0x2db   : > { %489 = vst [vmem:[%s290_s16] sm:$0xff] %v485_v21 }
 0x2dc   : > { %v698_v22 = vpop.f32.mrf.mxu1 }
 0x2dd   : > { %805 = shalt.err (!%p802_p7)
}
 0x2de   : > { %s806_s14 = scalar_lea.hbm %s1021_s27, 128  ;;  %s810_s11 = scalar_lea.hbm %s1070_s4, 512 }
 0x2df   : > { %p807_p9 = scmp.ne.s32.totalorder %s1021_s27, %s806_s14  ;;  %p811_p12 = scmp.lt.s32.totalorder %s1021_s27, %s1070_s4 }
 0x2e0   : > { %p812_p13 = scmp.lt.s32.totalorder %s810_s11, %s806_s14 }
 0x2e1   : > { %p808_p10 = pnand %p807_p9, %p949_p4 }
 0x2e2   : > { %p813_p0 = por %p812_p13, %p811_p12 }
 0x2e3   : > { %p809_p11 = pneg %p808_p10 }
 0x2e5   : > { %p814_p1 = pnand %p813_p0, %p809_p11 }
 0x2e7   : > { %817 = shalt.err (!%p814_p1)
}
 0x2e8   : > { %699 = dma.vmem_to_hbm [thread:$0]  (%p949_p4), %s1014_s17, 128, %s1021_s27, %s491_s29  }
 0x2e9 PF: > { %p710_p2 = scmp.ge.s32.totalorder %s872_s23, 2  ;;  %s536_s24 = sand.u32 1, %s852_s18  }
 0x2ea   : > { %s537_s25 = scalar_lea.sflag [#allocation3], %s536_s24 }
 0x2eb   : > { %p704_p3 = pnand %p710_p2, %p956_p8 }
 0x2ed   : > { %p705_p5 = pneg %p704_p3 }
 0x2ef   : > { %843 = dma.done.wait (%p705_p5), %s537_s25, 128  }
 0x2f0   : > { %845 = vsyncadd (%p705_p5), %s537_s25, 4294967168  ;;  %s546_s8 = scalar_lea.sflag [#allocation5], %s536_s24 }
 0x2f1   : > { %847 = dma.done.wait (%p705_p5), %s546_s8, 128  }
 0x2f2   : > { %849 = vsyncadd (%p705_p5), %s546_s8, 4294967168  ;;  %s22_s23 = sadd.s32 1, %s872_s23   ;;  %s1076_s18 = smov %s856_s19 }
 0x2f3   : > { %p19_p6 = scmp.ge.s32.totalorder %s22_s23, 6   ;;  %s1077_s19 = smov %s860_s20 }
 0x2f4   : > { %s1078_s20 = smov %s962_s6  ;;  %s1079_s21 = smov %s868_s22 }
 0x2f5   : > { %s1080_s22 = smov %s1082_s26  ;;  %21 = sbr.rel (!%p19_p6) target bundleno = 6 (0x6), region = 97 }
 0x2fa   :  { %551 = vsyncpa [#allocation3], 1 }
 0x2fb   :  { %553 = vsyncpa [#allocation3 + $0x1], 1 }
 0x2fc   :  { %554 = vsyncpa [#allocation5], 1 }
 0x2fd   :  { %556 = vsyncpa [#allocation5 + $0x1], 1 }

</bundles_post_ra>
